<compile_context>
chip_gen: v7x
topology: tpu7x:2x2x1
jax: 0.10.0
libtpu: 0.0.40
codegen_flags: <defaults>
</compile_context>

<pallas_src>
import jax
import jax.numpy as jnp
from jax.experimental import pallas as pl
from jax.experimental.pallas import tpu as pltpu


# Flipped to False (once) if this jax version rejects pipeline_mode=pl.Buffered(1).
_SINGLE_BUFFER_OK = True


def _patch_embed_kernel(x_ref, w_ref, b_ref, o_ref):
    # x_ref: (TM, Kp) bf16 patch tile; w_ref: (Kp, E) bf16 resident weight;
    # b_ref: (1, E) f32 resident bias; o_ref: (TM, E) out_dtype.
    acc = jnp.dot(x_ref[...], w_ref[...], preferred_element_type=jnp.float32)
    o_ref[...] = (acc + b_ref[...]).astype(o_ref.dtype)


def _round_up(v, m):
    return ((v + m - 1) // m) * m


def _vmem_capacity_bytes():
    try:
        return int(pltpu.get_tpu_info().vmem_capacity_bytes)
    except Exception:
        return 64 << 20  # conservative fallback = v7x physical VMEM


def _choose_tm(M, K, E, out_bytes, budget_bytes, cap=2048):
    """Pick the M-tile so (double-buffered input/output tiles + resident weight/bias)
    fit the VMEM budget. TM is 256-aligned (MXU/bf16-packing friendly, multiple of 128
    for v5e); for large M it is split so the parallel M grid has >=2 steps (v7x megacore)."""
    resident = K * E * 2 + E * 4                 # single-buffered weight (bf16) + bias (f32)
    per_row = 2 * (K * 2 + E * out_bytes)        # double-buffered patch row + output row
    avail = max(budget_bytes - resident, 8 * per_row)
    tm = min(cap, avail // per_row)
    if tm >= M:
        if M >= 1024:
            # Split into (at least) 2 blocks so both v7x TensorCores get work.
            tm = _round_up(-(-M // 2), 128)
        else:
            tm = M                               # single full-M block (always a legal block)
    elif tm >= 256:
        tm = (tm // 256) * 256
    else:
        tm = max(8, (tm // 8) * 8)
    return int(tm)


def patch_embed_forward(x, weight, bias, patch_size, *, out_dtype=jnp.float32, tile_m=None):
    """PatchEmbed forward.

    x: (B, C, H, W); weight: (E, C, ps, ps); bias: (E,).
    Returns (B, Np, E) in `out_dtype` (float32 by default, matching the PyTorch module;
    pass jnp.bfloat16 to halve the output HBM stream if the consumer tolerates it).
    `tile_m` is a test/tuning hook (must be a multiple of 8)."""
    global _SINGLE_BUFFER_OK

    ps = int(patch_size)
    B, C, H, W = x.shape
    E = weight.shape[0]
    Hp, Wp = H // ps, W // ps
    Np = Hp * Wp
    K = C * ps * ps
    M = B * Np
    out_bytes = jnp.dtype(out_dtype).itemsize

    # bf16 feed for the MXU (f32 accumulation in the kernel). Casting x before the patchify
    # lets XLA fuse the cast into the transpose copy -> the extra pass is half-width.
    x_bf = x.astype(jnp.bfloat16)
    patches = x_bf.reshape(B, C, Hp, ps, Wp, ps)
    patches = jnp.transpose(patches, (0, 2, 4, 1, 3, 5)).reshape(M, K)

    # Conv2d weight (E, C, ps, ps) -> (K, E); inner order (c, i, j) matches patches.
    w_flat = weight.astype(jnp.bfloat16).reshape(E, K).T
    b_row = bias.astype(jnp.float32).reshape(1, E)

    # Lane-align K when it is large but not a multiple of 128 (e.g. C=3, ps=14 -> 588):
    # zero-padding both operands keeps the result exact and restores lane-dense loads.
    Kp = K
    if K > 128 and K % 128 != 0:
        Kp = _round_up(K, 128)
        patches = jnp.pad(patches, ((0, 0), (0, Kp - K)))
        w_flat = jnp.pad(w_flat, ((0, Kp - K), (0, 0)))

    capacity = _vmem_capacity_bytes()
    budget = min(40 << 20, capacity // 2)            # usable by tiles + residents
    vmem_limit = int(min(capacity - (2 << 20), budget + (8 << 20)))

    tm = _choose_tm(M, Kp, E, out_bytes, budget) if tile_m is None else int(tile_m)
    grid = (pl.cdiv(M, tm),)

    cost = pl.CostEstimate(
        flops=2 * M * Kp * E,
        transcendentals=0,
        bytes_accessed=M * Kp * 2 + Kp * E * 2 + E * 4 + M * E * out_bytes,
    )

    def _build(single_buffer_resident):
        if single_buffer_resident:
            w_spec = pl.BlockSpec((Kp, E), lambda i: (0, 0), pipeline_mode=pl.Buffered(1))
            b_spec = pl.BlockSpec((1, E), lambda i: (0, 0), pipeline_mode=pl.Buffered(1))
        else:
            w_spec = pl.BlockSpec((Kp, E), lambda i: (0, 0))
            b_spec = pl.BlockSpec((1, E), lambda i: (0, 0))
        return pl.pallas_call(
            _patch_embed_kernel,
            out_shape=jax.ShapeDtypeStruct((M, E), out_dtype),
            grid_spec=pltpu.PrefetchScalarGridSpec(
                num_scalar_prefetch=0,
                grid=grid,
                in_specs=[
                    pl.BlockSpec((tm, Kp), lambda i: (i, 0)),   # streamed patch tiles
                    w_spec,                                     # resident weight
                    b_spec,                                     # resident bias
                ],
                out_specs=pl.BlockSpec((tm, E), lambda i: (i, 0)),
            ),
            compiler_params=pltpu.CompilerParams(
                dimension_semantics=("parallel",),              # megacore-shard the M axis
                vmem_limit_bytes=vmem_limit,                    # holds on v5e/v6e/v7x
                allow_input_fusion=[True, False, False],        # fuse patchify into input DMA
            ),
            cost_estimate=cost,
        )

    out = None
    if _SINGLE_BUFFER_OK:
        try:
            out = jax.block_until_ready(_build(True)(patches, w_flat, b_row))
        except Exception:
            _SINGLE_BUFFER_OK = False
    if out is None:
        out = jax.block_until_ready(_build(False)(patches, w_flat, b_row))

    return out.reshape(B, Np, E)


def _reference(x, weight, bias, ps):
    """PyTorch semantics (x.float(); Conv2d stride=ps; flatten(2).transpose(1,2)),
    evaluated on the same bf16-rounded operands the MXU sees, with f32 accumulation."""
    E = weight.shape[0]
    xb = x.astype(jnp.bfloat16).astype(jnp.float32)
    wb = weight.astype(jnp.bfloat16).astype(jnp.float32)
    out = jax.lax.conv_general_dilated(
        xb, wb, window_strides=(ps, ps), padding="VALID",
        dimension_numbers=("NCHW", "OIHW", "NCHW"),
    ) + bias.astype(jnp.float32).reshape(1, E, 1, 1)
    B = x.shape[0]
    return out.reshape(B, E, -1).transpose(0, 2, 1)


if __name__ == "__main__":
    keys = jax.random.split(jax.random.PRNGKey(0), 9)

    # Case 1: ps=4, C=4, E=128 (lane-dense E), B=2, 16x16 -> (2, 16, 128).
    x1 = jax.random.normal(keys[0], (2, 4, 16, 16), dtype=jnp.float32)
    w1 = jax.random.normal(keys[1], (128, 4, 4, 4), dtype=jnp.float32) * 0.02
    b1 = jax.random.normal(keys[2], (128,), dtype=jnp.float32) * 0.02
    out1 = jax.block_until_ready(patch_embed_forward(x1, w1, b1, 4))
    ref1 = _reference(x1, w1, b1, 4)
    assert out1.shape == (2, 16, 128) and out1.dtype == jnp.float32
    assert jnp.allclose(out1, ref1, atol=2e-3, rtol=2e-3)

    # Case 1b: optional bf16 output path (review item for memory-bound v6e/v7x).
    out1_bf = jax.block_until_ready(
        patch_embed_forward(x1, w1, b1, 4, out_dtype=jnp.bfloat16))
    assert out1_bf.dtype == jnp.bfloat16
    assert jnp.allclose(out1_bf.astype(jnp.float32), ref1, atol=1e-2, rtol=1e-2)

    # Case 2: non-divisible M with a forced small tile (M=36, TM=16) to exercise the
    # masked edge-block writeback (no stale VMEM rows may leak into the output).
    x2 = jax.random.normal(keys[3], (1, 2, 24, 24), dtype=jnp.float32)
    w2 = jax.random.normal(keys[4], (128, 2, 4, 4), dtype=jnp.float32) * 0.02
    b2 = jax.random.normal(keys[5], (128,), dtype=jnp.float32) * 0.02
    out2 = jax.block_until_ready(patch_embed_forward(x2, w2, b2, 4, tile_m=16))
    ref2 = _reference(x2, w2, b2, 4)
    assert out2.shape == (1, 36, 128)
    assert jnp.allclose(out2, ref2, atol=2e-3, rtol=2e-3)

    # Case 3: K = C*ps*ps = 192 (>128, not a multiple of 128) to exercise the K zero-padding.
    x3 = jax.random.normal(keys[6], (1, 3, 32, 32), dtype=jnp.float32)
    w3 = jax.random.normal(keys[7], (128, 3, 8, 8), dtype=jnp.float32) * 0.02
    b3 = jax.random.normal(keys[8], (128,), dtype=jnp.float32) * 0.02
    out3 = jax.block_until_ready(patch_embed_forward(x3, w3, b3, 8))
    ref3 = _reference(x3, w3, b3, 8)
    assert out3.shape == (1, 16, 128)
    assert jnp.allclose(out3, ref3, atol=2e-3, rtol=2e-3)

    print("KERNEL_OK")
</pallas_src>

<mosaic_0001>
module attributes {stable_mosaic.version = 11 : i64} {
  func.func @_patch_embed_kernel(%arg0: i32, %arg1: memref<32x64xbf16, #tpu.memory_space<vmem>>, %arg2: memref<64x128xbf16, #tpu.memory_space<vmem>>, %arg3: memref<1x128xf32, #tpu.memory_space<vmem>>, %arg4: memref<32x128xf32, #tpu.memory_space<vmem>>) attributes {dimension_semantics = [#tpu.dimension_semantics<parallel>], iteration_bounds = array<i64: 1>, scalar_prefetch = 0 : i64, scratch_operands = 0 : i64, tpu.core_type = #tpu.core_type<tc>, window_params = [{transform_indices = @transform_0, window_bounds = array<i64: 32, 64>}, {pipeline_mode = #tpu.pipeline_mode<synchronous>, transform_indices = @transform_1, window_bounds = array<i64: 64, 128>}, {pipeline_mode = #tpu.pipeline_mode<synchronous>, transform_indices = @transform_2, window_bounds = array<i64: 1, 128>}, {transform_indices = @transform_3, window_bounds = array<i64: 32, 128>}]} {
    %c0 = arith.constant 0 : index
    %c0_0 = arith.constant 0 : index
    %0 = vector.load %arg1[%c0, %c0_0] : memref<32x64xbf16, #tpu.memory_space<vmem>>, vector<32x64xbf16>
    %c0_1 = arith.constant 0 : index
    %c0_2 = arith.constant 0 : index
    %1 = vector.load %arg2[%c0_1, %c0_2] : memref<64x128xbf16, #tpu.memory_space<vmem>>, vector<64x128xbf16>
    %cst = arith.constant dense<0.000000e+00> : vector<32x128xf32>
    %2 = tpu.matmul %0, %1, %cst {dimension_numbers = #tpu.dot_dimension_numbers<[1], [0], [0], [1], [0, 0, 1, 1], [], []>} : vector<32x64xbf16>, vector<64x128xbf16>, vector<32x128xf32> -> vector<32x128xf32>
    %c0_3 = arith.constant 0 : index
    %c0_4 = arith.constant 0 : index
    %3 = vector.load %arg3[%c0_3, %c0_4] : memref<1x128xf32, #tpu.memory_space<vmem>>, vector<1x128xf32>
    %4 = vector.broadcast %3 : vector<1x128xf32> to vector<32x128xf32>
    %5 = arith.addf %2, %4 : vector<32x128xf32>
    %c0_5 = arith.constant 0 : index
    %c0_6 = arith.constant 0 : index
    %6 = vector.load %arg4[%c0_5, %c0_6] : memref<32x128xf32, #tpu.memory_space<vmem>>, vector<32x128xf32>
    tpu.vector_store %arg4[%c0_5, %c0_6], %5 {strides = array<i32>} : memref<32x128xf32, #tpu.memory_space<vmem>>, vector<32x128xf32>,
    return
  }
  func.func @transform_0(%arg0: i32) -> (i32, i32) {
    %c0_i32 = arith.constant 0 : i32
    %c0_i32_0 = arith.constant 0 : i32
    return %arg0, %c0_i32 : i32, i32
  }
  func.func @transform_1(%arg0: i32) -> (i32, i32) {
    %c0_i32 = arith.constant 0 : i32
    %c0_i32_0 = arith.constant 0 : i32
    %c0_i32_1 = arith.constant 0 : i32
    return %c0_i32, %c0_i32_0 : i32, i32
  }
  func.func @transform_2(%arg0: i32) -> (i32, i32) {
    %c0_i32 = arith.constant 0 : i32
    %c0_i32_0 = arith.constant 0 : i32
    %c0_i32_1 = arith.constant 0 : i32
    return %c0_i32, %c0_i32_0 : i32, i32
  }
  func.func @transform_3(%arg0: i32) -> (i32, i32) {
    %c0_i32 = arith.constant 0 : i32
    %c0_i32_0 = arith.constant 0 : i32
    return %arg0, %c0_i32 : i32, i32
  }
}

module attributes {stable_mosaic.version = 11 : i64} {
  func.func @_patch_embed_kernel(%arg0: i32, %arg1: memref<32x64xbf16, #tpu.memory_space<vmem>>, %arg2: memref<64x128xbf16, #tpu.memory_space<vmem>>, %arg3: memref<1x128xf32, #tpu.memory_space<vmem>>, %arg4: memref<32x128xf32, #tpu.memory_space<vmem>>) attributes {dimension_semantics = [#tpu.dimension_semantics<parallel>], iteration_bounds = array<i64: 1>, scalar_prefetch = 0 : i64, scratch_operands = 0 : i64, tpu.core_type = #tpu.core_type<tc>, window_params = [{transform_indices = @transform_0, window_bounds = array<i64: 32, 64>}, {pipeline_mode = #tpu.pipeline_mode<synchronous>, transform_indices = @transform_1, window_bounds = array<i64: 64, 128>}, {pipeline_mode = #tpu.pipeline_mode<synchronous>, transform_indices = @transform_2, window_bounds = array<i64: 1, 128>}, {transform_indices = @transform_3, window_bounds = array<i64: 32, 128>}]} {
    %c0 = arith.constant 0 : index
    %c0_0 = arith.constant 0 : index
    %0 = vector.load %arg1[%c0, %c0_0] : memref<32x64xbf16, #tpu.memory_space<vmem>>, vector<32x64xbf16>
    %c0_1 = arith.constant 0 : index
    %c0_2 = arith.constant 0 : index
    %1 = vector.load %arg2[%c0_1, %c0_2] : memref<64x128xbf16, #tpu.memory_space<vmem>>, vector<64x128xbf16>
    %cst = arith.constant dense<0.000000e+00> : vector<32x128xf32>
    %2 = tpu.matmul %0, %1, %cst {dimension_numbers = #tpu.dot_dimension_numbers<[1], [0], [0], [1], [0, 0, 1, 1], [], []>} : vector<32x64xbf16>, vector<64x128xbf16>, vector<32x128xf32> -> vector<32x128xf32>
    %c0_3 = arith.constant 0 : index
    %c0_4 = arith.constant 0 : index
    %3 = vector.load %arg3[%c0_3, %c0_4] : memref<1x128xf32, #tpu.memory_space<vmem>>, vector<1x128xf32>
    %4 = vector.broadcast %3 : vector<1x128xf32> to vector<32x128xf32>
    %5 = arith.addf %2, %4 : vector<32x128xf32>
    %c0_5 = arith.constant 0 : index
    %c0_6 = arith.constant 0 : index
    %6 = vector.load %arg4[%c0_5, %c0_6] : memref<32x128xf32, #tpu.memory_space<vmem>>, vector<32x128xf32>
    tpu.vector_store %arg4[%c0_5, %c0_6], %5 {strides = array<i32>} : memref<32x128xf32, #tpu.memory_space<vmem>>, vector<32x128xf32>,
    return
  }
  func.func @transform_0(%arg0: i32) -> (i32, i32) {
    %c0_i32 = arith.constant 0 : i32
    %c0_i32_0 = arith.constant 0 : i32
    return %arg0, %c0_i32 : i32, i32
  }
  func.func @transform_1(%arg0: i32) -> (i32, i32) {
    %c0_i32 = arith.constant 0 : i32
    %c0_i32_0 = arith.constant 0 : i32
    %c0_i32_1 = arith.constant 0 : i32
    return %c0_i32, %c0_i32_0 : i32, i32
  }
  func.func @transform_2(%arg0: i32) -> (i32, i32) {
    %c0_i32 = arith.constant 0 : i32
    %c0_i32_0 = arith.constant 0 : i32
    %c0_i32_1 = arith.constant 0 : i32
    return %c0_i32, %c0_i32_0 : i32, i32
  }
  func.func @transform_3(%arg0: i32) -> (i32, i32) {
    %c0_i32 = arith.constant 0 : i32
    %c0_i32_0 = arith.constant 0 : i32
    return %arg0, %c0_i32 : i32, i32
  }
}

</mosaic_0001>

<bundles_post_ra>
// kernel: tpu_custom_call.1
= control target key start
LH: loop header
LB: loop body
LE: loop exit
PB: predicated region body
PF: predicated region fallthrough
CT: control target
= control target key end

     0   :  { %8 = vsyncpa [#allocation3], 0  ;;  %s353_s0 = inlined_call_operand.hbm [shape: bf16[32,64], index: 0, kind: input, shape index: {}]   ;;  %s354_s1 = inlined_call_operand.hbm [shape: bf16[64,128], index: 1, kind: input, shape index: {}]   ;;  %s355_s2 = inlined_call_operand.vmem [shape: f32[1,128], index: 2, kind: input, shape index: {}]   ;;  %s356_s3 = inlined_call_operand.hbm [shape: f32[32,128], index: 3, kind: output, shape index: {}]  }
   0x1   :  { %9 = vsyncpa [#allocation6], 0 }
   0x2   :  { %10 = vsyncpa [#allocation4], 0  ;;  %s287_s12 = smov [#allocation2]   ;;  %s215_s16 = scalar_lea.hbm %s353_s0, 256 }
   0x3   :  { %s16_s13 = sshll.u32 %s287_s12, 4  ;;  %p216_p0 = scmp.ne.s32.totalorder %s353_s0, %s215_s16  ;;  %s17_s13 = int_to_ptr.vmem [resolvable:$true] %s16_s13 }
   0x4   :  { %p219_p1 = scmp.lt.u32.totalorder %s215_s16, %s353_s0 }
   0x6   :  { %p221_p2 = pnand %p219_p1, %p216_p0 }
   0x8   :  { %224 = shalt.err (!%p221_p2)
}
   0x9   :  { %s225_s21 = scalar_lea.vmem %s17_s13, 256  ;;  %p230_p4 = scmp.lt.s32.totalorder %s17_s13, %s17_s13 }
   0xa   :  { %p226_p3 = scmp.ne.s32.totalorder %s17_s13, %s225_s21  ;;  %p231_p5 = scmp.lt.s32.totalorder %s225_s21, %s225_s21 }
   0xc   :  { %p232_p6 = por %p231_p5, %p230_p4 }
   0xe   :  { %p233_p7 = pnand %p232_p6, %p226_p3 }
  0x10   :  { %236 = shalt.err (!%p233_p7)
}
  0x11   :  { %s288_s22 = smov 64   ;;  %s289_s23 = smov 4  }
  0x12   :  { %22 = dma.hbm_to_vmem [thread:$0]  %s353_s0, 256, %s17_s13, [#allocation3], %s288_s22, %s288_s22, %s289_s23  }
  0x13   :  { %s290_s26 = smov [#allocation5]   ;;  %s237_s30 = scalar_lea.hbm %s354_s1, 512 }
  0x14   :  { %s28_s27 = sshll.u32 %s290_s26, 4  ;;  %p238_p8 = scmp.ne.s32.totalorder %s354_s1, %s237_s30  ;;  %s29_s27 = int_to_ptr.vmem [resolvable:$true] %s28_s27 }
  0x15   :  { %p241_p9 = scmp.lt.u32.totalorder %s237_s30, %s354_s1 }
  0x17   :  { %p243_p10 = pnand %p241_p9, %p238_p8 }
  0x19   :  { %246 = shalt.err (!%p243_p10)
}
  0x1a   :  { %s247_s8 = scalar_lea.vmem %s29_s27, 512  ;;  %p252_p12 = scmp.lt.s32.totalorder %s29_s27, %s29_s27 }
  0x1b   :  { %p248_p11 = scmp.ne.s32.totalorder %s29_s27, %s247_s8  ;;  %p253_p13 = scmp.lt.s32.totalorder %s247_s8, %s247_s8 }
  0x1d   :  { %p254_p0 = por %p253_p13, %p252_p12 }
  0x1f   :  { %p255_p1 = pnand %p254_p0, %p248_p11 }
  0x21   :  { %258 = shalt.err (!%p255_p1)
}
  0x22   :  { %34 = dma.hbm_to_vmem [thread:$0]  %s354_s1, 512, %s29_s27, [#allocation6], %s288_s22, %s288_s22, %s289_s23  }
  0x23   :  { %281 = dma.done.wait [#allocation3], 256  }
  0x24   :  { %282 = vsyncadd [#allocation3], 4294967040 }
  0x25   :  { %283 = dma.done.wait [#allocation6], 512  }
  0x26   :  { %284 = vsyncadd [#allocation6], 4294966784  ;;  %v209_v0 = vld [vmem:[#allocation5] sm:$0xff]   ;;  %v210_v1 = vld [vmem:[#allocation5 + $0x8] sm:$0xff]   ;;  %vm97_vm0 = vcmask 523264   ;;  %s291_s11 = smov [#allocation7]  }
  0x27   :  { %190 = vmatprep.subr.bf16.mxu0 %v209_v0  ;;  %v211_v2 = vld [vmem:[#allocation5 + $0x10] sm:$0xff]   ;;  %v212_v4 = vld [vmem:[#allocation5 + $0x18] sm:$0xff]   ;;  %s162_s12 = sshll.u32 %s291_s11, 4  ;;  %s163_s12 = int_to_ptr.vmem [resolvable:$true] %s162_s12 }
  0x28   :  { %191 = vmatpush3.bf16.msra.mxu0 %v209_v0  ;;  %v213_v3 = vld [vmem:[#allocation2] sm:$0xff]   ;;  %v214_v5 = vld [vmem:[#allocation2 + $0x8] sm:$0xff]   ;;  %s259_s13 = scalar_lea.vmem %s163_s12, 512  ;;  %p264_p3 = scmp.lt.s32.totalorder %s163_s12, %s163_s12 }
  0x29   :  { %192 = vmatprep.subr.bf16.mxu0 %v210_v1  ;;  %198 = vmatprep.mubr.msk.bf16.mxu0 %vm97_vm0, %v213_v3  ;;  %v175_v6 = vld [vmem:[%s355_s2] ss:$0 sm:$0xff]  ;;  %p260_p2 = scmp.ne.s32.totalorder %s163_s12, %s259_s13  ;;  %p265_p4 = scmp.lt.s32.totalorder %s259_s13, %s259_s13 }
  0x2b   :  { %p266_p5 = por %p265_p4, %p264_p3 }
  0x2c   :  { %193 = vmatpush3.bf16.msra.mxu0 %v210_v1 }
  0x2d   :  { %194 = vmatprep.subr.bf16.mxu0 %v211_v2  ;;  %p267_p6 = pnand %p266_p5, %p260_p2 }
  0x30   :  { %195 = vmatpush3.bf16.msra.mxu0 %v211_v2 }
  0x31   :  { %196 = vmatprep.subr.bf16.mxu0 %v212_v4 }
  0x34   :  { %197 = vmatpush3.bf16.msra.mxu0 %v212_v4 }
  0x37   :  { %199 = vmatmul.mubr.msk.bf16.vlgmr.msra.gmra.mrb[0].mxu0 %vm97_vm0, %v214_v5 }
 0x10a   :  { %v200_v7 = vpop.f32.mrb[0].mxu0 }
 0x10b   :  { %v147_v8 = vadd.f32 %v200_v7, %v175_v6  ;;  %v138_v9 = vpop.f32.mrb[1].mxu0 }
 0x10c   :  { %v139_v10 = vadd.f32 %v175_v6, %v138_v9  ;;  %v201_v11 = vpop.f32.mrb[2].mxu0 }
 0x10d   :  { %155 = vst [vmem:[#allocation7 + $0x10] sm:$0xff] %v147_v8  ;;  %v150_v12 = vadd.f32 %v201_v11, %v175_v6  ;;  %v141_v13 = vpop.f32.mrb[3].mxu0 }
 0x10e   :  { %153 = vst [vmem:[#allocation7] sm:$0xff] %v139_v10  ;;  %v142_v14 = vadd.f32 %v175_v6, %v141_v13 }
 0x10f   :  { %156 = vst [vmem:[#allocation7 + $0x18] sm:$0xff] %v150_v12 }
 0x110   :  { %154 = vst [vmem:[#allocation7 + $0x8] sm:$0xff] %v142_v14 }
 0x111   :  { %270 = shalt.err (!%p267_p6)
}
 0x112   :  { %s271_s15 = scalar_lea.hbm %s356_s3, 512 }
 0x113   :  { %p272_p7 = scmp.ne.s32.totalorder %s356_s3, %s271_s15  ;;  %p275_p8 = scmp.lt.u32.totalorder %s271_s15, %s356_s3 }
 0x115   :  { %p277_p9 = pnand %p275_p8, %p272_p7 }
 0x117   :  { %280 = shalt.err (!%p277_p9)
}
 0x118   :  { %s292_s20 = smov 128   ;;  %s293_s21 = smov 8  }
 0x119   :  { %168 = dma.vmem_to_hbm [thread:$0]  %s163_s12, 512, %s356_s3, [#allocation4], %s292_s20, %s292_s20, %s293_s21  }
 0x11a   :  { %285 = dma.done.wait [#allocation4], 512  }
 0x11b   :  { %286 = vsyncadd [#allocation4], 4294966784 }
 0x11c   :  { %172 = vsyncpa [#allocation3], 1 }
 0x11d   :  { %173 = vsyncpa [#allocation6], 1 }
 0x11e   :  { %174 = vsyncpa [#allocation4], 1 }

// kernel: tpu_custom_call.1
= control target key start
LH: loop header
LB: loop body
LE: loop exit
PB: predicated region body
PF: predicated region fallthrough
CT: control target
= control target key end

     0   :  { %8 = vsyncpa [#allocation3], 0  ;;  %s353_s0 = inlined_call_operand.hbm [shape: bf16[32,64], index: 0, kind: input, shape index: {}]   ;;  %s354_s1 = inlined_call_operand.hbm [shape: bf16[64,128], index: 1, kind: input, shape index: {}]   ;;  %s355_s2 = inlined_call_operand.vmem [shape: f32[1,128], index: 2, kind: input, shape index: {}]   ;;  %s356_s3 = inlined_call_operand.hbm [shape: f32[32,128], index: 3, kind: output, shape index: {}]  }
   0x1   :  { %9 = vsyncpa [#allocation6], 0 }
   0x2   :  { %10 = vsyncpa [#allocation4], 0  ;;  %s287_s12 = smov [#allocation2]   ;;  %s215_s16 = scalar_lea.hbm %s353_s0, 256 }
   0x3   :  { %s16_s13 = sshll.u32 %s287_s12, 4  ;;  %p216_p0 = scmp.ne.s32.totalorder %s353_s0, %s215_s16  ;;  %s17_s13 = int_to_ptr.vmem [resolvable:$true] %s16_s13 }
   0x4   :  { %p219_p1 = scmp.lt.u32.totalorder %s215_s16, %s353_s0 }
   0x6   :  { %p221_p2 = pnand %p219_p1, %p216_p0 }
   0x8   :  { %224 = shalt.err (!%p221_p2)
}
   0x9   :  { %s225_s21 = scalar_lea.vmem %s17_s13, 256  ;;  %p230_p4 = scmp.lt.s32.totalorder %s17_s13, %s17_s13 }
   0xa   :  { %p226_p3 = scmp.ne.s32.totalorder %s17_s13, %s225_s21  ;;  %p231_p5 = scmp.lt.s32.totalorder %s225_s21, %s225_s21 }
   0xc   :  { %p232_p6 = por %p231_p5, %p230_p4 }
   0xe   :  { %p233_p7 = pnand %p232_p6, %p226_p3 }
  0x10   :  { %236 = shalt.err (!%p233_p7)
}
  0x11   :  { %s288_s22 = smov 64   ;;  %s289_s23 = smov 4  }
  0x12   :  { %22 = dma.hbm_to_vmem [thread:$0]  %s353_s0, 256, %s17_s13, [#allocation3], %s288_s22, %s288_s22, %s289_s23  }
  0x13   :  { %s290_s26 = smov [#allocation5]   ;;  %s237_s30 = scalar_lea.hbm %s354_s1, 512 }
  0x14   :  { %s28_s27 = sshll.u32 %s290_s26, 4  ;;  %p238_p8 = scmp.ne.s32.totalorder %s354_s1, %s237_s30  ;;  %s29_s27 = int_to_ptr.vmem [resolvable:$true] %s28_s27 }
  0x15   :  { %p241_p9 = scmp.lt.u32.totalorder %s237_s30, %s354_s1 }
  0x17   :  { %p243_p10 = pnand %p241_p9, %p238_p8 }
  0x19   :  { %246 = shalt.err (!%p243_p10)
}
  0x1a   :  { %s247_s8 = scalar_lea.vmem %s29_s27, 512  ;;  %p252_p12 = scmp.lt.s32.totalorder %s29_s27, %s29_s27 }
  0x1b   :  { %p248_p11 = scmp.ne.s32.totalorder %s29_s27, %s247_s8  ;;  %p253_p13 = scmp.lt.s32.totalorder %s247_s8, %s247_s8 }
  0x1d   :  { %p254_p0 = por %p253_p13, %p252_p12 }
  0x1f   :  { %p255_p1 = pnand %p254_p0, %p248_p11 }
  0x21   :  { %258 = shalt.err (!%p255_p1)
}
  0x22   :  { %34 = dma.hbm_to_vmem [thread:$0]  %s354_s1, 512, %s29_s27, [#allocation6], %s288_s22, %s288_s22, %s289_s23  }
  0x23   :  { %281 = dma.done.wait [#allocation3], 256  }
  0x24   :  { %282 = vsyncadd [#allocation3], 4294967040 }
  0x25   :  { %283 = dma.done.wait [#allocation6], 512  }
  0x26   :  { %284 = vsyncadd [#allocation6], 4294966784  ;;  %v209_v0 = vld [vmem:[#allocation5] sm:$0xff]   ;;  %v210_v1 = vld [vmem:[#allocation5 + $0x8] sm:$0xff]   ;;  %vm97_vm0 = vcmask 523264   ;;  %s291_s11 = smov [#allocation7]  }
  0x27   :  { %190 = vmatprep.subr.bf16.mxu0 %v209_v0  ;;  %v211_v2 = vld [vmem:[#allocation5 + $0x10] sm:$0xff]   ;;  %v212_v4 = vld [vmem:[#allocation5 + $0x18] sm:$0xff]   ;;  %s162_s12 = sshll.u32 %s291_s11, 4  ;;  %s163_s12 = int_to_ptr.vmem [resolvable:$true] %s162_s12 }
  0x28   :  { %191 = vmatpush3.bf16.msra.mxu0 %v209_v0  ;;  %v213_v3 = vld [vmem:[#allocation2] sm:$0xff]   ;;  %v214_v5 = vld [vmem:[#allocation2 + $0x8] sm:$0xff]   ;;  %s259_s13 = scalar_lea.vmem %s163_s12, 512  ;;  %p264_p3 = scmp.lt.s32.totalorder %s163_s12, %s163_s12 }
  0x29   :  { %192 = vmatprep.subr.bf16.mxu0 %v210_v1  ;;  %198 = vmatprep.mubr.msk.bf16.mxu0 %vm97_vm0, %v213_v3  ;;  %v175_v6 = vld [vmem:[%s355_s2] ss:$0 sm:$0xff]  ;;  %p260_p2 = scmp.ne.s32.totalorder %s163_s12, %s259_s13  ;;  %p265_p4 = scmp.lt.s32.totalorder %s259_s13, %s259_s13 }
  0x2b   :  { %p266_p5 = por %p265_p4, %p264_p3 }
  0x2c   :  { %193 = vmatpush3.bf16.msra.mxu0 %v210_v1 }
  0x2d   :  { %194 = vmatprep.subr.bf16.mxu0 %v211_v2  ;;  %p267_p6 = pnand %p266_p5, %p260_p2 }
  0x30   :  { %195 = vmatpush3.bf16.msra.mxu0 %v211_v2 }
  0x31   :  { %196 = vmatprep.subr.bf16.mxu0 %v212_v4 }
  0x34   :  { %197 = vmatpush3.bf16.msra.mxu0 %v212_v4 }
  0x37   :  { %199 = vmatmul.mubr.msk.bf16.vlgmr.msra.gmra.mrb[0].mxu0 %vm97_vm0, %v214_v5 }
 0x10a   :  { %v200_v7 = vpop.f32.mrb[0].mxu0 }
 0x10b   :  { %v147_v8 = vadd.f32 %v200_v7, %v175_v6  ;;  %v138_v9 = vpop.f32.mrb[1].mxu0 }
 0x10c   :  { %v139_v10 = vadd.f32 %v175_v6, %v138_v9  ;;  %v201_v11 = vpop.f32.mrb[2].mxu0 }
 0x10d   :  { %155 = vst [vmem:[#allocation7 + $0x10] sm:$0xff] %v147_v8  ;;  %v150_v12 = vadd.f32 %v201_v11, %v175_v6  ;;  %v141_v13 = vpop.f32.mrb[3].mxu0 }
 0x10e   :  { %153 = vst [vmem:[#allocation7] sm:$0xff] %v139_v10  ;;  %v142_v14 = vadd.f32 %v175_v6, %v141_v13 }
 0x10f   :  { %156 = vst [vmem:[#allocation7 + $0x18] sm:$0xff] %v150_v12 }
 0x110   :  { %154 = vst [vmem:[#allocation7 + $0x8] sm:$0xff] %v142_v14 }
 0x111   :  { %270 = shalt.err (!%p267_p6)
}
 0x112   :  { %s271_s15 = scalar_lea.hbm %s356_s3, 512 }
 0x113   :  { %p272_p7 = scmp.ne.s32.totalorder %s356_s3, %s271_s15  ;;  %p275_p8 = scmp.lt.u32.totalorder %s271_s15, %s356_s3 }
 0x115   :  { %p277_p9 = pnand %p275_p8, %p272_p7 }
 0x117   :  { %280 = shalt.err (!%p277_p9)
}
 0x118   :  { %s292_s20 = smov 128   ;;  %s293_s21 = smov 8  }
 0x119   :  { %168 = dma.vmem_to_hbm [thread:$0]  %s163_s12, 512, %s356_s3, [#allocation4], %s292_s20, %s292_s20, %s293_s21  }
 0x11a   :  { %285 = dma.done.wait [#allocation4], 512  }
 0x11b   :  { %286 = vsyncadd [#allocation4], 4294966784 }
 0x11c   :  { %172 = vsyncpa [#allocation3], 1 }
 0x11d   :  { %173 = vsyncpa [#allocation6], 1 }
 0x11e   :  { %174 = vsyncpa [#allocation4], 1 }

</bundles_post_ra>
